<compile_context>
chip_gen: v6e
topology: v6e:2x2x1
jax: 0.10.0
libtpu: 0.0.40
codegen_flags: <defaults>
</compile_context>

<pallas_src>
import jax
import jax.numpy as jnp
from jax.experimental import pallas as pl
from jax.experimental.pallas import tpu as pltpu


def _lecun(x):
    return 1.7159 * jnp.tanh(0.666 * x)


def cfc_kernel(x_ref, w0_ref, b0_ref, w1_ref, b1_ref, wh_ref, bh_ref, out_ref):
    # x_ref: (tm, D_in+H+1) bf16 packed [inp | hx | ts]
    # w0_ref: (D_in+H+1, BU) bf16 (last row is zero so the ts column is inert)
    H = out_ref.shape[-1]
    Dp = w0_ref.shape[0]

    x = x_ref[...]
    ts = x[:, Dp - 1:Dp].astype(jnp.float32)          # (tm, 1), broadcasts over H

    # backbone layer 0: cat([inp, hx]) @ W0 + b0 as a single lane-dense dot
    z0 = jnp.dot(x, w0_ref[...], preferred_element_type=jnp.float32) + b0_ref[...]
    h0 = _lecun(z0)

    # backbone layer 1
    z1 = (jnp.dot(h0.astype(w1_ref.dtype), w1_ref[...],
                  preferred_element_type=jnp.float32) + b1_ref[...])
    h1 = _lecun(z1)

    # fused head projection: [ff1 | ff2 | time_a | time_b] in one (BU, 4H=128)
    # lane-full matmul, then in-vreg slices.
    heads = (jnp.dot(h1.astype(wh_ref.dtype), wh_ref[...],
                     preferred_element_type=jnp.float32) + bh_ref[...])

    # one 64-lane tanh for both ff heads, then slice
    ff = jnp.tanh(heads[:, :2 * H])
    ff1 = ff[:, :H]
    ff2 = ff[:, H:]
    t_a = heads[:, 2 * H:3 * H]
    t_b = heads[:, 3 * H:4 * H]

    # sigmoid(x) == 0.5*(tanh(0.5*x) + 1): one EUP push instead of exp+recip
    t_interp = 0.5 * (jnp.tanh(0.5 * (t_a * ts + t_b)) + 1.0)

    # gated interpolation (no_gate=False): ff1*(1-t) + t*ff2 == ff1 + t*(ff2-ff1)
    out_ref[...] = (ff1 + t_interp * (ff2 - ff1)).astype(out_ref.dtype)


def _pick_tm(M, target=1024):
    """Row tile: big (amortize ~0.35us/step overhead) but with >=2 grid steps
    whenever possible so v7x's two TensorCores both get work."""
    m8 = -(-M // 8) * 8
    if m8 >= 2 * target:
        return target
    return max(8, (-(-m8 // 16)) * 8)   # ~half the rows, multiple of 8


def cfc_cell_forward(inp, hx, ts, params, *, tm=None):
    """inp: [B, T, input_size], hx: [B, T, hidden], ts: [B, T] -> [B, T, hidden] (bf16)."""
    B, T, D_in = inp.shape
    H = hx.shape[-1]
    M = B * T

    if ts.shape[0] != B:  # mirror of the torch guard
        ts = ts[:B, :]

    (w0, b0, w1, b1, wf1, bf1, wf2, bf2, wta, bta, wtb, btb) = params
    BU = w0.shape[1]
    Dp = D_in + H + 1  # packed feature width: [inp | hx | ts]

    # One-time weight packing (device-side, outside the kernel).
    w0_packed = jnp.concatenate(
        [w0, jnp.zeros((1, BU), w0.dtype)], axis=0).astype(jnp.bfloat16)        # (Dp, BU)
    w1_b = w1.astype(jnp.bfloat16)                                              # (BU, BU)
    w_head = jnp.concatenate([wf1, wf2, wta, wtb], axis=1).astype(jnp.bfloat16)  # (BU, 4H)
    b_head = jnp.concatenate([bf1, bf2, bta, btb], axis=1)                      # (1, 4H) f32

    if tm is None:
        tm = _pick_tm(M)
    Mp = -(-M // tm) * tm
    pad = Mp - M

    # Single lane-dense bf16 input slab; the pad+cast already copies, so the
    # concat costs no extra HBM pass and collapses 3 DMA streams into 1.
    x_packed = jnp.concatenate(
        [inp.reshape(M, D_in).astype(jnp.float32),
         hx.reshape(M, H).astype(jnp.float32),
         ts.reshape(M, 1).astype(jnp.float32)], axis=1).astype(jnp.bfloat16)
    x_packed = jnp.pad(x_packed, ((0, pad), (0, 0)))

    full = lambda shape: pl.BlockSpec(shape, lambda i: (0, 0))

    out = pl.pallas_call(
        cfc_kernel,
        out_shape=jax.ShapeDtypeStruct((Mp, H), jnp.bfloat16),
        grid_spec=pltpu.PrefetchScalarGridSpec(
            num_scalar_prefetch=0,
            grid=(Mp // tm,),
            in_specs=[
                pl.BlockSpec((tm, Dp), lambda i: (i, 0)),        # packed rows
                full((Dp, BU)), full((1, BU)),                   # backbone L0
                full((BU, BU)), full((1, BU)),                   # backbone L1
                full((BU, 4 * H)), full((1, 4 * H)),             # fused heads
            ],
            out_specs=pl.BlockSpec((tm, H), lambda i: (i, 0)),
        ),
        compiler_params=pltpu.CompilerParams(
            dimension_semantics=("parallel",)),
    )(x_packed, w0_packed, b0, w1_b, b1, w_head, b_head)

    return out[:M].reshape(B, T, H)


def _reference(inp, hx, ts, params):
    (w0, b0, w1, b1, wf1, bf1, wf2, bf2, wta, bta, wtb, btb) = params
    x = jnp.concatenate([inp, hx], axis=2)
    h = _lecun(x @ w0 + b0)
    h = _lecun(h @ w1 + b1)
    ff1 = jnp.tanh(h @ wf1 + bf1)
    ff2 = jnp.tanh(h @ wf2 + bf2)
    t_a = h @ wta + bta
    t_b = h @ wtb + btb
    t_interp = jax.nn.sigmoid(t_a * ts[..., None] + t_b)
    return ff1 * (1.0 - t_interp) + t_interp * ff2


def make_params(key, d_cat, bu, hidden):
    keys = jax.random.split(key, 12)
    scale = 0.1

    def lin(kw, kb, fi, fo):
        return (scale * jax.random.normal(kw, (fi, fo), jnp.float32),
                scale * jax.random.normal(kb, (1, fo), jnp.float32))

    w0, b0 = lin(keys[0], keys[1], d_cat, bu)
    w1, b1 = lin(keys[2], keys[3], bu, bu)
    wf1, bf1 = lin(keys[4], keys[5], bu, hidden)
    wf2, bf2 = lin(keys[6], keys[7], bu, hidden)
    wta, bta = lin(keys[8], keys[9], bu, hidden)
    wtb, btb = lin(keys[10], keys[11], bu, hidden)
    return (w0, b0, w1, b1, wf1, bf1, wf2, bf2, wta, bta, wtb, btb)


if __name__ == "__main__":
    B, T = 2, 8
    input_size, hidden_size, backbone_units = 16, 32, 64

    key = jax.random.PRNGKey(0)
    k_in, k_hx, k_ts, k_p = jax.random.split(key, 4)

    inp = jax.random.normal(k_in, (B, T, input_size), jnp.float32)
    hx = jax.random.normal(k_hx, (B, T, hidden_size), jnp.float32)
    ts = jax.random.uniform(k_ts, (B, T), jnp.float32)

    params = make_params(k_p, input_size + hidden_size, backbone_units,
                         hidden_size)

    out = cfc_cell_forward(inp, hx, ts, params)
    out = jax.block_until_ready(out)

    ref = _reference(inp, hx, ts, params)
    assert out.shape == (B, T, hidden_size)
    # Matmul operands, the packed ts column and the output are bf16 (f32
    # accumulation); outputs are tanh/sigmoid-bounded, so 2e-2 is comfortable
    # while still catching packing/slicing regressions (tightened from 5e-2).
    assert jnp.allclose(out.astype(jnp.float32), ref, atol=2e-2, rtol=2e-2), \
        "mismatch vs reference"

    print("KERNEL_OK")
</pallas_src>

<mosaic_0001>
module attributes {stable_mosaic.version = 11 : i64} {
  func.func @cfc_kernel(%arg0: i32, %arg1: memref<8x49xbf16, #tpu.memory_space<vmem>>, %arg2: memref<49x64xbf16, #tpu.memory_space<vmem>>, %arg3: memref<1x64xf32, #tpu.memory_space<vmem>>, %arg4: memref<64x64xbf16, #tpu.memory_space<vmem>>, %arg5: memref<1x64xf32, #tpu.memory_space<vmem>>, %arg6: memref<64x128xbf16, #tpu.memory_space<vmem>>, %arg7: memref<1x128xf32, #tpu.memory_space<vmem>>, %arg8: memref<8x32xbf16, #tpu.memory_space<vmem>>) attributes {dimension_semantics = [#tpu.dimension_semantics<parallel>], iteration_bounds = array<i64: 2>, scalar_prefetch = 0 : i64, scratch_operands = 0 : i64, tpu.core_type = #tpu.core_type<tc>, window_params = [{transform_indices = @transform_0, window_bounds = array<i64: 8, 49>}, {pipeline_mode = #tpu.pipeline_mode<synchronous>, transform_indices = @transform_1, window_bounds = array<i64: 49, 64>}, {pipeline_mode = #tpu.pipeline_mode<synchronous>, transform_indices = @transform_2, window_bounds = array<i64: 1, 64>}, {pipeline_mode = #tpu.pipeline_mode<synchronous>, transform_indices = @transform_3, window_bounds = array<i64: 64, 64>}, {pipeline_mode = #tpu.pipeline_mode<synchronous>, transform_indices = @transform_4, window_bounds = array<i64: 1, 64>}, {pipeline_mode = #tpu.pipeline_mode<synchronous>, transform_indices = @transform_5, window_bounds = array<i64: 64, 128>}, {pipeline_mode = #tpu.pipeline_mode<synchronous>, transform_indices = @transform_6, window_bounds = array<i64: 1, 128>}, {transform_indices = @transform_7, window_bounds = array<i64: 8, 32>}]} {
    %c0 = arith.constant 0 : index
    %c0_0 = arith.constant 0 : index
    %0 = vector.load %arg1[%c0, %c0_0] : memref<8x49xbf16, #tpu.memory_space<vmem>>, vector<8x49xbf16>
    %1 = vector.extract_strided_slice %0 {offsets = [0, 48], sizes = [8, 1], strides = [1, 1]} : vector<8x49xbf16> to vector<8x1xbf16>
    %2 = arith.extf %1 : vector<8x1xbf16> to vector<8x1xf32>
    %c0_1 = arith.constant 0 : index
    %c0_2 = arith.constant 0 : index
    %3 = vector.load %arg2[%c0_1, %c0_2] : memref<49x64xbf16, #tpu.memory_space<vmem>>, vector<49x64xbf16>
    %cst = arith.constant dense<0.000000e+00> : vector<8x64xf32>
    %4 = tpu.matmul %0, %3, %cst {dimension_numbers = #tpu.dot_dimension_numbers<[1], [0], [0], [1], [0, 0, 1, 1], [], []>} : vector<8x49xbf16>, vector<49x64xbf16>, vector<8x64xf32> -> vector<8x64xf32>
    %c0_3 = arith.constant 0 : index
    %c0_4 = arith.constant 0 : index
    %5 = vector.load %arg3[%c0_3, %c0_4] : memref<1x64xf32, #tpu.memory_space<vmem>>, vector<1x64xf32>
    %6 = vector.broadcast %5 : vector<1x64xf32> to vector<8x64xf32>
    %7 = arith.addf %4, %6 : vector<8x64xf32>
    %cst_5 = arith.constant 6.660000e-01 : f32
    %8 = vector.broadcast %cst_5 : f32 to vector<8x64xf32>
    %9 = arith.mulf %8, %7 : vector<8x64xf32>
    %10 = math.tanh %9 : vector<8x64xf32>
    %cst_6 = arith.constant 1.715900e+00 : f32
    %11 = vector.broadcast %cst_6 : f32 to vector<8x64xf32>
    %12 = arith.mulf %11, %10 : vector<8x64xf32>
    %13 = arith.truncf %12 : vector<8x64xf32> to vector<8x64xbf16>
    %c0_7 = arith.constant 0 : index
    %c0_8 = arith.constant 0 : index
    %14 = vector.load %arg4[%c0_7, %c0_8] : memref<64x64xbf16, #tpu.memory_space<vmem>>, vector<64x64xbf16>
    %cst_9 = arith.constant dense<0.000000e+00> : vector<8x64xf32>
    %15 = tpu.matmul %13, %14, %cst_9 {dimension_numbers = #tpu.dot_dimension_numbers<[1], [0], [0], [1], [0, 0, 1, 1], [], []>} : vector<8x64xbf16>, vector<64x64xbf16>, vector<8x64xf32> -> vector<8x64xf32>
    %c0_10 = arith.constant 0 : index
    %c0_11 = arith.constant 0 : index
    %16 = vector.load %arg5[%c0_10, %c0_11] : memref<1x64xf32, #tpu.memory_space<vmem>>, vector<1x64xf32>
    %17 = vector.broadcast %16 : vector<1x64xf32> to vector<8x64xf32>
    %18 = arith.addf %15, %17 : vector<8x64xf32>
    %cst_12 = arith.constant 6.660000e-01 : f32
    %19 = vector.broadcast %cst_12 : f32 to vector<8x64xf32>
    %20 = arith.mulf %19, %18 : vector<8x64xf32>
    %21 = math.tanh %20 : vector<8x64xf32>
    %cst_13 = arith.constant 1.715900e+00 : f32
    %22 = vector.broadcast %cst_13 : f32 to vector<8x64xf32>
    %23 = arith.mulf %22, %21 : vector<8x64xf32>
    %24 = arith.truncf %23 : vector<8x64xf32> to vector<8x64xbf16>
    %c0_14 = arith.constant 0 : index
    %c0_15 = arith.constant 0 : index
    %25 = vector.load %arg6[%c0_14, %c0_15] : memref<64x128xbf16, #tpu.memory_space<vmem>>, vector<64x128xbf16>
    %cst_16 = arith.constant dense<0.000000e+00> : vector<8x128xf32>
    %26 = tpu.matmul %24, %25, %cst_16 {dimension_numbers = #tpu.dot_dimension_numbers<[1], [0], [0], [1], [0, 0, 1, 1], [], []>} : vector<8x64xbf16>, vector<64x128xbf16>, vector<8x128xf32> -> vector<8x128xf32>
    %c0_17 = arith.constant 0 : index
    %c0_18 = arith.constant 0 : index
    %27 = vector.load %arg7[%c0_17, %c0_18] : memref<1x128xf32, #tpu.memory_space<vmem>>, vector<1x128xf32>
    %28 = vector.broadcast %27 : vector<1x128xf32> to vector<8x128xf32>
    %29 = arith.addf %26, %28 : vector<8x128xf32>
    %30 = vector.extract_strided_slice %29 {offsets = [0, 0], sizes = [8, 64], strides = [1, 1]} : vector<8x128xf32> to vector<8x64xf32>
    %31 = math.tanh %30 : vector<8x64xf32>
    %32 = vector.extract_strided_slice %31 {offsets = [0, 0], sizes = [8, 32], strides = [1, 1]} : vector<8x64xf32> to vector<8x32xf32>
    %33 = vector.extract_strided_slice %31 {offsets = [0, 32], sizes = [8, 32], strides = [1, 1]} : vector<8x64xf32> to vector<8x32xf32>
    %34 = vector.extract_strided_slice %29 {offsets = [0, 64], sizes = [8, 32], strides = [1, 1]} : vector<8x128xf32> to vector<8x32xf32>
    %35 = vector.extract_strided_slice %29 {offsets = [0, 96], sizes = [8, 32], strides = [1, 1]} : vector<8x128xf32> to vector<8x32xf32>
    %36 = vector.broadcast %2 : vector<8x1xf32> to vector<8x32xf32>
    %37 = arith.mulf %34, %36 : vector<8x32xf32>
    %38 = arith.addf %37, %35 : vector<8x32xf32>
    %cst_19 = arith.constant 5.000000e-01 : f32
    %39 = vector.broadcast %cst_19 : f32 to vector<8x32xf32>
    %40 = arith.mulf %39, %38 : vector<8x32xf32>
    %41 = math.tanh %40 : vector<8x32xf32>
    %cst_20 = arith.constant 1.000000e+00 : f32
    %42 = vector.broadcast %cst_20 : f32 to vector<8x32xf32>
    %43 = arith.addf %41, %42 : vector<8x32xf32>
    %cst_21 = arith.constant 5.000000e-01 : f32
    %44 = vector.broadcast %cst_21 : f32 to vector<8x32xf32>
    %45 = arith.mulf %44, %43 : vector<8x32xf32>
    %46 = arith.subf %33, %32 : vector<8x32xf32>
    %47 = arith.mulf %45, %46 : vector<8x32xf32>
    %48 = arith.addf %32, %47 : vector<8x32xf32>
    %49 = arith.truncf %48 : vector<8x32xf32> to vector<8x32xbf16>
    %c0_22 = arith.constant 0 : index
    %c0_23 = arith.constant 0 : index
    %50 = vector.load %arg8[%c0_22, %c0_23] : memref<8x32xbf16, #tpu.memory_space<vmem>>, vector<8x32xbf16>
    tpu.vector_store %arg8[%c0_22, %c0_23], %49 {strides = array<i32>} : memref<8x32xbf16, #tpu.memory_space<vmem>>, vector<8x32xbf16>,
    return
  }
  func.func @transform_0(%arg0: i32) -> (i32, i32) {
    %c0_i32 = arith.constant 0 : i32
    %c0_i32_0 = arith.constant 0 : i32
    return %arg0, %c0_i32 : i32, i32
  }
  func.func @transform_1(%arg0: i32) -> (i32, i32) {
    %c0_i32 = arith.constant 0 : i32
    %c0_i32_0 = arith.constant 0 : i32
    %c0_i32_1 = arith.constant 0 : i32
    return %c0_i32, %c0_i32_0 : i32, i32
  }
  func.func @transform_2(%arg0: i32) -> (i32, i32) {
    %c0_i32 = arith.constant 0 : i32
    %c0_i32_0 = arith.constant 0 : i32
    %c0_i32_1 = arith.constant 0 : i32
    return %c0_i32, %c0_i32_0 : i32, i32
  }
  func.func @transform_3(%arg0: i32) -> (i32, i32) {
    %c0_i32 = arith.constant 0 : i32
    %c0_i32_0 = arith.constant 0 : i32
    %c0_i32_1 = arith.constant 0 : i32
    return %c0_i32, %c0_i32_0 : i32, i32
  }
  func.func @transform_4(%arg0: i32) -> (i32, i32) {
    %c0_i32 = arith.constant 0 : i32
    %c0_i32_0 = arith.constant 0 : i32
    %c0_i32_1 = arith.constant 0 : i32
    return %c0_i32, %c0_i32_0 : i32, i32
  }
  func.func @transform_5(%arg0: i32) -> (i32, i32) {
    %c0_i32 = arith.constant 0 : i32
    %c0_i32_0 = arith.constant 0 : i32
    %c0_i32_1 = arith.constant 0 : i32
    return %c0_i32, %c0_i32_0 : i32, i32
  }
  func.func @transform_6(%arg0: i32) -> (i32, i32) {
    %c0_i32 = arith.constant 0 : i32
    %c0_i32_0 = arith.constant 0 : i32
    %c0_i32_1 = arith.constant 0 : i32
    return %c0_i32, %c0_i32_0 : i32, i32
  }
  func.func @transform_7(%arg0: i32) -> (i32, i32) {
    %c0_i32 = arith.constant 0 : i32
    %c0_i32_0 = arith.constant 0 : i32
    return %arg0, %c0_i32 : i32, i32
  }
}

</mosaic_0001>

<bundles_post_ra>
// kernel: tpu_custom_call.1
= control target key start
LH: loop header
LB: loop body
LE: loop exit
PB: predicated region body
PF: predicated region fallthrough
CT: control target
= control target key end

     0   :  { %s1373_s0 = inlined_call_operand.hbm [shape: bf16[16,49], index: 0, kind: input, shape index: {}]   ;;  %s1374_s1 = inlined_call_operand.hbm [shape: bf16[49,64], index: 1, kind: input, shape index: {}]   ;;  %s1375_s2 = inlined_call_operand.vmem [shape: f32[1,64], index: 2, kind: input, shape index: {}]   ;;  %s1376_s3 = inlined_call_operand.hbm [shape: bf16[64,64], index: 3, kind: input, shape index: {}]   ;;  %s1377_s4 = inlined_call_operand.vmem [shape: f32[1,64], index: 4, kind: input, shape index: {}]   ;;  %s1378_s5 = inlined_call_operand.hbm [shape: bf16[64,128], index: 5, kind: input, shape index: {}]   ;;  %s1379_s6 = inlined_call_operand.vmem [shape: f32[1,128], index: 6, kind: input, shape index: {}]   ;;  %s1380_s7 = inlined_call_operand.hbm [shape: bf16[16,32], index: 7, kind: output, shape index: {}]  }
   0x1   :  { %1385 = sst [smem:[#allocation15_spill]] %s1374_s1 }
   0x2   :  { %1386 = sst [smem:[#allocation16_spill]] %s1376_s3 }
   0x3   :  { %12 = vsyncpa [#allocation3], 0 }
   0x4   :  { %14 = vsyncpa [#allocation3 + $0x1], 0 }
   0x5   :  { %15 = vsyncpa [#allocation6], 0 }
   0x6   :  { %16 = vsyncpa [#allocation9], 0 }
   0x7   :  { %17 = vsyncpa [#allocation4], 0 }
   0x8   :  { %19 = vsyncpa [#allocation4 + $0x1], 0  ;;  %s1174_s24 = smov 0   ;;  %s1176_s25 = smov 0  }
   0x9   :  { %s1178_s26 = smov 0   ;;  %s1180_s27 = smov 0  }
   0xa LB: > { %s1195_s28 = sadd.s32 4294967295, %s1118_s27   ;;  %s746_s29 = sadd.s32 4294967294, %s1118_s27   ;;  %s1118_s27 = sphi %s1180_s27, %s1408_s27   ;;  %s1114_s26 = sphi %s1178_s26, %s1407_s26   ;;  %s1110_s25 = sphi %s1176_s25, %s1406_s25   ;;  %s1106_s24 = sphi %s1174_s24, %s1405_s24  }
   0xb   : > { %p45_p0 = scmp.ne.s32.totalorder %s1110_s25, %s1106_s24  ;;  %p1381_p1 = scmp.eq.s32.totalorder %s1195_s28, 0 }
   0xc   : > { %p201_p3 = scmp.eq.s32.totalorder %s746_s29, 1  ;;  %p747_p5 = scmp.ge.s32.totalorder %s1118_s27, 1 }
   0xd   : > { %p1204_p4 = por %p1381_p1, %p45_p0  ;;  %p208_p7 = scmp.lt.s32.totalorder %s1118_s27, 3 }
   0xe   : > { %p1209_p6 = por %p201_p3, %p45_p0  ;;  %s1120_s10 = smov [#allocation5]  }
   0xf   : > { %s1387_s30 = scalar_select %p1204_p4, 1, 0 }
  0x10   : > { %s1388_s8 = scalar_select %p1209_p6, 1, 0 }
  0x11   : > { %p1214_p8 = pnand %p747_p5, %p208_p7  ;;  %s220_s11 = sshll.u32 %s1120_s10, 4  ;;  %s221_s11 = int_to_ptr.vmem [resolvable:$true] %s220_s11 }
  0x12   : > { %s1121_s13 = smov [#allocation7]   ;;  %s1122_s15 = smov [#allocation8]  }
  0x13   : > { %s1389_s9 = scalar_select %p1214_p8, 1, 0 }
  0x14   : > { %p849_p9 = pneg %p1214_p8  ;;  %s236_s14 = sshll.u32 %s1121_s13, 4  ;;  %s237_s14 = int_to_ptr.vmem [resolvable:$true] %s236_s14 }
  0x15   : > { %s252_s16 = sshll.u32 %s1122_s15, 4  ;;  %s951_s17 = scalar_lea.vmem %s221_s11, 448  ;;  %s253_s16 = int_to_ptr.vmem [resolvable:$true] %s252_s16 }
  0x16   : > { %p1223_p11 = pnand %p849_p9, %p1381_p1  ;;  %p952_p13 = scmp.ne.s32.totalorder %s221_s11, %s951_s17 }
  0x17   : > { %p959_p5 = scmp.lt.s32.totalorder %s221_s11, %s221_s11  ;;  %p960_p7 = scmp.lt.s32.totalorder %s951_s17, %s951_s17 }
  0x18   : > { %p942_p12 = pneg %p1223_p11 }
  0x19   : > { %p961_p9 = por %p960_p7, %p959_p5 }
  0x1a   : > { %p954_p0 = pnand %p952_p13, %p942_p12 }
  0x1c   : > { %p955_p3 = pneg %p954_p0 }
  0x1e   : > { %p962_p10 = pnand %p961_p9, %p955_p3 }
  0x20   : > { %965 = shalt.err (!%p962_p10)
}
  0x21   : > { %s1123_s18 = smov 64   ;;  %s1124_s19 = smov 4  }
  0x22   : > { %s1391_s1 = sld [smem:[#allocation15_spill]]  ;;  %s977_s22 = scalar_lea.vmem %s237_s14, 512 }
  0x23   : > { %p978_p1 = scmp.ne.s32.totalorder %s237_s14, %s977_s22  ;;  %p985_p2 = scmp.lt.s32.totalorder %s237_s14, %s237_s14 }
  0x24   : > { %p986_p6 = scmp.lt.s32.totalorder %s977_s22, %s977_s22 }
  0x25   : > { %p980_p13 = pnand %p978_p1, %p942_p12 }
  0x26   : > { %p987_p5 = por %p986_p6, %p985_p2 }
  0x27   : > { %p981_p0 = pneg %p980_p13 }
  0x28   : > { %852 = dma.hbm_to_vmem [thread:$0]  (!%p1223_p11), %s1391_s1, 448, %s221_s11, [#allocation6], %s1123_s18, %s1123_s18, %s1124_s19  }
  0x29   : > { %p988_p3 = pnand %p987_p5, %p981_p0 }
  0x2b   : > { %991 = shalt.err (!%p988_p3)
}
  0x2c   : > { %s1392_s3 = sld [smem:[#allocation16_spill]]  ;;  %s1003_s10 = scalar_lea.vmem %s253_s16, 512 }
  0x2d   : > { %p1004_p10 = scmp.ne.s32.totalorder %s253_s16, %s1003_s10  ;;  %p1011_p9 = scmp.lt.s32.totalorder %s253_s16, %s253_s16 }
  0x2e   : > { %p1012_p13 = scmp.lt.s32.totalorder %s1003_s10, %s1003_s10 }
  0x2f   : > { %p1006_p7 = pnand %p1004_p10, %p942_p12 }
  0x30   : > { %p1013_p4 = por %p1012_p13, %p1011_p9 }
  0x31   : > { %p1007_p1 = pneg %p1006_p7 }
  0x32   : > { %855 = dma.hbm_to_vmem [thread:$0]  (!%p1223_p11), %s1392_s3, 512, %s237_s14, [#allocation6], %s1123_s18, %s1123_s18, %s1124_s19  }
  0x33   : > { %p1014_p2 = pnand %p1013_p4, %p1007_p1 }
  0x35   : > { %1017 = shalt.err (!%p1014_p2)
}
  0x36   : > { %858 = dma.hbm_to_vmem [thread:$0]  (!%p1223_p11), %s1378_s5, 512, %s253_s16, [#allocation9], %s1123_s18, %s1123_s18, %s1124_s19  }
  0x37   : > { %s1254_s14 = sadd.s32 1, %s1118_s27   ;;  %s32_s12 = sadd.s32 1, %s1114_s26 }
  0x38   : > { %s29_s15 = ssub.s32 %s1118_s27, %s1254_s14  ;;  %p39_p6 = scmp.ne.s32.totalorder %s1114_s26, %s1110_s25 }
  0x39   : > { %p30_p4 = scmp.eq.s32.totalorder %s29_s15, 0  ;;  %p40_p12 = scmp.eq.s32.totalorder %s1118_s27, 0 }
  0x3a   : > { %p870_p0 = scmp.lt.s32.totalorder %s1118_s27, 2  ;;  %p1393_p3 = scmp.eq.s32.totalorder %s1195_s28, 1 }
  0x3b   : > { %s1264_s17 = scalar_select %p30_p4, %s1114_s26, %s32_s12  }
  0x3c   : > { %p41_p5 = por %p40_p12, %p39_p6  ;;  %p1268_p10 = por %p1393_p3, %p39_p6 }
  0x3d   : > { %s269_s21 = sand.u32 1, %s1114_s26   ;;  %s753_s22 = sshll.u32 %s1118_s27, 6 }
  0x3e   : > { %s1394_s20 = scalar_select %p1268_p10, 1, 0 }
  0x3f   : > { %s752_s16 = sshll.u32 %s269_s21, 2  ;;  %s1277_s23 = scalar_lea.hbm %s1373_s0, %s753_s22 }
  0x40   : > { %s273_s29 = scalar_lea.vmem [#allocation2], %s752_s16  ;;  %p1279_p11 = pnand %p870_p0, %p41_p5 }
  0x41   : > { %s280_s10 = sshll.u32 %s273_s29, 4  ;;  %s270_s13 = scalar_lea.sflag [#allocation3], %s269_s21  ;;  %s281_s10 = int_to_ptr.vmem [resolvable:$true] %s280_s10 }
  0x42   : > { %s1018_s15 = scalar_lea.hbm %s1277_s23, 64  ;;  %p1020_p1 = pneg %p1279_p11 }
  0x43   : > { %p1019_p7 = scmp.ne.s32.totalorder %s1277_s23, %s1018_s15  ;;  %s1023_s18 = scalar_lea.hbm %s1373_s0, 128 }
  0x44   : > { %p1024_p2 = scmp.lt.s32.totalorder %s1277_s23, %s1373_s0  ;;  %p1025_p4 = scmp.lt.s32.totalorder %s1023_s18, %s1018_s15 }
  0x45   : > { %p1021_p9 = pnand %p1020_p1, %p1019_p7 }
  0x46   : > { %p1026_p6 = por %p1025_p4, %p1024_p2 }
  0x47   : > { %p1022_p13 = pneg %p1021_p9 }
  0x49   : > { %p1027_p12 = pnand %p1026_p6, %p1022_p13 }
  0x4b   : > { %1030 = shalt.err (!%p1027_p12)
}
  0x4c   : > { %s1031_s29 = scalar_lea.vmem %s281_s10, 64  ;;  %s1125_s21 = smov [#allocation2]  }
  0x4d   : > { %p1032_p0 = scmp.ne.s32.totalorder %s281_s10, %s1031_s29  ;;  %s1036_s1 = sshll.u32 %s1125_s21, 4  ;;  %s1037_s1 = int_to_ptr.vmem [resolvable:$false] %s1036_s1 }
  0x4e   : > { %s1038_s3 = scalar_lea.vmem %s1037_s1, 128  ;;  %p1039_p7 = scmp.lt.s32.totalorder %s281_s10, %s1037_s1 }
  0x4f   : > { %p1034_p5 = pnand %p1032_p0, %p1020_p1  ;;  %p1040_p9 = scmp.lt.s32.totalorder %s1038_s3, %s1031_s29 }
  0x51   : > { %p1035_p3 = pneg %p1034_p5  ;;  %p1041_p10 = por %p1040_p9, %p1039_p7 }
  0x53   : > { %p1042_p8 = pnand %p1041_p10, %p1035_p3 }
  0x55   : > { %1045 = shalt.err (!%p1042_p8)
}
  0x56   : > { %862 = dma.hbm_to_vmem [thread:$0]  (!%p1279_p11), %s1277_s23, 64, %s281_s10, %s270_s13  }
  0x57   : > { %p1396_p13 = scmp.ne.s32.totalorder %s1389_s9, 0 }
  0x58   : > { %s1300_s15 = sand.u32 (!%p1396_p13), 1, %s1110_s25   ;;  %p1397_p10 = scmp.ne.s32.totalorder (!%p1396_p13), %s1387_s30, 0 }
  0x59   : > { %289 = sbr.rel (%p1396_p13) target bundleno = 1125 (0x465), region = 48  ;;  %s755_s12 = sshll.u32 (!%p1396_p13), %s1300_s15, 2 }
  0x5a   : > { %s292_s1 = scalar_lea.sflag (!%p1396_p13), [#allocation3], %s1300_s15  ;;  %s295_s3 = scalar_lea.vmem (!%p1396_p13), [#allocation2], %s755_s12 }
  0x5e   : > { %1089 = dma.done.wait (%p1397_p10), %s292_s1, 64  }
  0x5f   : > { %1091 = vsyncadd (%p1397_p10), %s292_s1, 4294967232  ;;  %p1398_p8 = scmp.eq.s32.totalorder %s1195_s28, 0 }
  0x61   : > { %1093 = dma.done.wait (%p1398_p8), [#allocation6], 960   ;;  %p1399_p11 = pmov %p1398_p8 }
  0x62   : > { %p1400_p1 = pmov %p1398_p8 }
  0x63   : > { %1095 = vsyncadd (%p1399_p11), [#allocation6], 4294966336 }
  0x64   : > { %1097 = dma.done.wait (%p1400_p1), [#allocation9], 512   ;;  %p1401_p2 = pmov %p1400_p1 }
  0x65   : > { %v1126_v0 = vmov 0.0   ;;  %vm1127_vm0 = vmmov 0   ;;  %vm380_vm1 = vcmask 1040384   ;;  %v1128_v1 = vmov 0   ;;  %v921_v5 = vld [vmem:[#allocation5 + $0x10] sm:$0xff]   ;;  %v922_v6 = vld [vmem:[#allocation5 + $0x8] sm:$0xff]  }
  0x66   : > { %1099 = vsyncadd (%p1401_p2), [#allocation9], 4294966784  ;;  %797 = vmatprep.subr.bf16.mxu0 %v1126_v0  ;;  %805 = vmatprep.mubr.msk.bf16.mxu0 %vm1127_vm0, %v1126_v0  ;;  %v382_v2 = vsel %vm380_vm1, 65535, %v1128_v1  ;;  %v920_v3 = vld [vmem:[#allocation5 + $0x18] ss:$0 sps:$4 sm:$0x11]  }
  0x67   : > { %809 = vmatprep.subr.bf16.mxu1 %v1126_v0  ;;  %817 = vmatprep.mubr.msk.bf16.mxu1 %vm1127_vm0, %v1126_v0  ;;  %v384_v4 = vand.u32 %v920_v3, %v382_v2  ;;  %v923_v7 = vld [vmem:[#allocation5] sm:$0xff]   ;;  %v1320_v8 = vld [vmem:[%s295_s3] sm:$0xf]  ;;  %vm376_vm2 = vcmask 400384   ;;  %v925_v10 = vld [vmem:[#allocation7 + $0x10] sm:$0xff]   ;;  %vm469_vm3 = vcmask 523264  }
  0x68   : > { %v924_v9 = vld [vmem:[#allocation7 + $0x18] sm:$0xff]   ;;  %v926_v11 = vld [vmem:[#allocation7 + $0x8] sm:$0xff]   ;;  %v927_v12 = vld [vmem:[#allocation7] sm:$0xff]   ;;  %v1129_v37 = vmov 48   ;;  %s1130_s22 = smov 96   ;;  %s1131_s18 = smov 32   ;;  %v340_v45 = vunpack.c.l.bf16 %v1320_v8 }
  0x69   : > { %798 = vmatpush3.bf16.msra.mxu0 %v384_v4  ;;  %810 = vmatpush3.bf16.msra.mxu1 %v924_v9  ;;  %v760_v13 = vld [vmem:[%s1375_s2] ss:$0 sm:$0xff]  ;;  %v929_v24 = vld [vmem:[#allocation8 + $0x10] sm:$0xff]   ;;  %v930_v25 = vld [vmem:[#allocation8 + $0x8] sm:$0xff]   ;;  %s1132_s19 = smov 64   ;;  %s779_s16 = sshll.u32 %s1195_s28, 6 }
  0x6a   : > { %799 = vmatprep.subr.bf16.mxu0 %v1126_v0  ;;  %811 = vmatprep.subr.bf16.mxu1 %v1126_v0  ;;  %v928_v23 = vld [vmem:[#allocation8 + $0x18] sm:$0xff]   ;;  %v931_v26 = vld [vmem:[#allocation8] sm:$0xff]   ;;  %s337_s29 = scalar_lea.vmem [#allocation10], %s755_s12  ;;  %vm631_vm4 = vcmask 257024   ;;  %s645_s30 = scalar_lea.hbm %s1380_s7, %s779_s16 }
  0x6b   : > { %v766_v27 = vld [vmem:[%s1377_s4] ss:$0 sm:$0xff]  ;;  %919 = vset.pattern.permute.xlu0 %v1129_v37  ;;  %s647_s21 = sshll.u32 %s337_s29, 4  ;;  %s634_s9 = scalar_lea.sflag [#allocation4], %s1300_s15  ;;  %s648_s21 = int_to_ptr.vmem [resolvable:$true] %s647_s21 }
  0x6c   : > { %v772_v38 = vld [vmem:[%s1379_s6] ss:$0 sm:$0xff]  ;;  %s1046_s23 = scalar_lea.vmem %s648_s21, 64  ;;  %p1402_p6 = scmp.ne.s32.totalorder %s1394_s20, 0 }
  0x6d   : > { %800 = vmatpush3.bf16.msra.mxu0 %v921_v5  ;;  %812 = vmatpush3.bf16.msra.mxu1 %v925_v10  ;;  %p1047_p4 = scmp.ne.s32.totalorder %s648_s21, %s1046_s23  ;;  %s1133_s10 = smov [#allocation10]  }
  0x6e   : > { %801 = vmatprep.subr.bf16.mxu0 %v1126_v0  ;;  %813 = vmatprep.subr.bf16.mxu1 %v1126_v0  ;;  %s1050_s28 = sshll.u32 %s1133_s10, 4  ;;  %s1051_s28 = int_to_ptr.vmem [resolvable:$false] %s1050_s28 }
  0x6f   : > { %p1048_p12 = pnand %p1047_p4, %p1402_p6  ;;  %s1052_s12 = scalar_lea.vmem %s1051_s28, 128 }
  0x70   : > { %p1053_p5 = scmp.lt.s32.totalorder %s648_s21, %s1051_s28  ;;  %p1054_p3 = scmp.lt.s32.totalorder %s1052_s12, %s1046_s23 }
  0x71   : > { %802 = vmatpush3.bf16.msra.mxu0 %v922_v6  ;;  %814 = vmatpush3.bf16.msra.mxu1 %v926_v11  ;;  %p1049_p0 = pneg %p1048_p12 }
  0x72   : > { %803 = vmatprep.subr.bf16.mxu0 %v1126_v0  ;;  %815 = vmatprep.subr.bf16.mxu1 %v1126_v0  ;;  %p1055_p7 = por %p1054_p3, %p1053_p5 }
  0x74   : > { %p1056_p9 = pnand %p1055_p7, %p1049_p0 }
  0x75   : > { %804 = vmatpush3.bf16.msra.mxu0 %v923_v7  ;;  %816 = vmatpush3.bf16.msra.mxu1 %v927_v12 }
  0x76   : > { %821 = vmatprep.subr.bf16.mxu0 %v1126_v0 }
  0x78   : > { %806 = vmatmul.mubr.msk.bf16.vlgmr.msra.gmra.mxu0 %vm376_vm2, %v1320_v8 }
  0x79   : > { %829 = vmatprep.mubr.msk.bf16.mxu0 %vm1127_vm0, %v1126_v0  ;;  %822 = vmatpush3.bf16.msra.mxu0 %v928_v23 }
  0x7a   : > { %823 = vmatprep.subr.bf16.mxu0 %v1126_v0 }
  0x7d   : > { %824 = vmatpush3.bf16.msra.mxu0 %v929_v24 }
  0x7e   : > { %825 = vmatprep.subr.bf16.mxu0 %v1126_v0 }
  0x81   : > { %826 = vmatpush3.bf16.msra.mxu0 %v930_v25 }
  0x82   : > { %827 = vmatprep.subr.bf16.mxu0 %v1126_v0 }
  0x85   : > { %828 = vmatpush3.bf16.msra.mxu0 %v931_v26 }
 0x138   : > { %v420_v14 = vpop.f32.mrf.mxu0 }
 0x139   : > { %v421_v15 = vadd.f32 %v760_v13, %v420_v14 }
 0x13a   : > { %v807_v16 = vpop.f32.mrf.mxu0 }
 0x13b   : > { %v426_v17 = vmul.f32 0.666, %v421_v15 }
 0x13c   : > { %v423_v18 = vpop.f32.mrf.mxu0 }
 0x13d   : > { %932 = vtanh.f32 %v426_v17 }
 0x13e   : > { %v808_v19 = vpop.f32.mrf.mxu0 }
 0x14a   : > { %v933_v20 = vpop.eup %932 }
 0x14b   : > { %v428_v21 = vmul.f32 1.7159, %v933_v20 }
 0x14d   : > { %v429_v22 = vpack.c.bf16 %v428_v21, %v428_v21 }
 0x14f   : > { %818 = vmatmul.mubr.msk.bf16.vlgmr.msra.gmra.mxu1 %vm469_vm3, %v429_v22 }
 0x20f   : > { %v507_v28 = vpop.f32.mrf.mxu1 }
 0x210   : > { %v508_v29 = vadd.f32 %v766_v27, %v507_v28 }
 0x211   : > { %v819_v30 = vpop.f32.mrf.mxu1 }
 0x212   : > { %v513_v31 = vmul.f32 0.666, %v508_v29 }
 0x213   : > { %v510_v32 = vpop.f32.mrf.mxu1 }
 0x214   : > { %934 = vtanh.f32 %v513_v31 }
 0x215   : > { %v820_v33 = vpop.f32.mrf.mxu1 }
 0x221   : > { %v935_v34 = vpop.eup %934 }
 0x222   : > { %v515_v35 = vmul.f32 1.7159, %v935_v34 }
 0x224   : > { %v516_v36 = vpack.c.bf16 %v515_v35, %v515_v35 }
 0x226   : > { %830 = vmatmul.mubr.msk.bf16.vlgmr.msra.gmra.mxu0 %vm469_vm3, %v516_v36 }
 0x2e6   : > { %v593_v39 = vpop.f32.mrf.mxu0 }
 0x2e7   : > { %v594_v40 = vadd.f32 %v772_v38, %v593_v39 }
 0x2e8   : > { %v831_v41 = vpop.f32.mrf.mxu0 }
 0x2e9   : > { %936 = vtanh.f32 %v594_v40  ;;  %607 = vrot.lane.b32.xlu1 %v594_v40, %s1130_s22 }
 0x2ea   : > { %v596_v42 = vpop.f32.mrf.mxu0 }
 0x2ec   : > { %v832_v43 = vpop.f32.mrf.mxu0 }
 0x2f6   : > { %v937_v44 = vpop.eup %936 }
 0x2f7   : > { %616 = vrot.lane.b32.xlu0 %v937_v44, %s1131_s18 }
 0x2fb   : > { %602 = vperm.xlu0 %919, %v340_v45  }
 0x35b   : > { %v608_v50 = vpop.permute.xlu1 %607 }
 0x369   : > { %v617_v46 = vpop.permute.xlu0 %616 }
 0x36a   : > { %v619_v47 = vsub.f32 %v937_v44, %v617_v46 }
 0x36c   : > { %621 = vrot.lane.b32.xlu1 %v619_v47, %s1131_s18 }
 0x376   : > { %v603_v48 = vpop.permute.xlu0 %602 }
 0x377   : > { %v605_v49 = vmul.f32 %v603_v48, %v594_v40 }
 0x379   : > { %v610_v51 = vadd.f32 %v608_v50, %v605_v49 }
 0x37b   : > { %v611_v52 = vmul.f32 0.5, %v610_v51 }
 0x37d   : > { %938 = vtanh.f32 %v611_v52 }
 0x38a   : > { %v939_v53 = vpop.eup %938 }
 0x38b   : > { %v613_v54 = vadd.f32 1.0, %v939_v53 }
 0x38d   : > { %v614_v55 = vmul.f32 0.5, %v613_v54 }
 0x3de   : > { %v622_v56 = vpop.permute.xlu1 %621 }
 0x3df   : > { %v624_v57 = vmul.f32 %v622_v56, %v614_v55 }
 0x3e1   : > { %626 = vrot.lane.b32.xlu1 %v624_v57, %s1132_s19 }
 0x453   : > { %v627_v58 = vpop.permute.xlu1 %626 }
 0x454   : > { %v629_v59 = vadd.f32 %v937_v44, %v627_v58 }
 0x456   : > { %v630_v60 = vpack.c.bf16 %v629_v59, %v629_v59 }
 0x458   : > { %632 = vst.msk [vmem:[%s337_s29] sm:$0xf] %vm631_vm4, %v630_v60 }
 0x459   : > { %1059 = shalt.err (!%p1056_p9)
}
 0x45a   : > { %s1060_s11 = scalar_lea.hbm %s645_s30, 64  ;;  %s1064_s22 = scalar_lea.hbm %s1380_s7, 128 }
 0x45b   : > { %p1061_p13 = scmp.ne.s32.totalorder %s645_s30, %s1060_s11  ;;  %p1065_p11 = scmp.lt.s32.totalorder %s645_s30, %s1380_s7 }
 0x45c   : > { %p1066_p1 = scmp.lt.s32.totalorder %s1064_s22, %s1060_s11 }
 0x45d   : > { %p1062_p10 = pnand %p1061_p13, %p1402_p6 }
 0x45e   : > { %p1067_p2 = por %p1066_p1, %p1065_p11 }
 0x45f   : > { %p1063_p8 = pneg %p1062_p10 }
 0x461   : > { %p1068_p4 = pnand %p1067_p2, %p1063_p8 }
 0x463   : > { %1071 = shalt.err (!%p1068_p4)
}
 0x464   : > { %847 = dma.vmem_to_hbm [thread:$0]  (%p1402_p6), %s648_s21, 64, %s645_s30, %s634_s9  }
 0x465 PF: > { %s659_s16 = sand.u32 1, %s1106_s24   ;;  %p1403_p12 = scmp.ne.s32.totalorder %s1388_s8, 0 }
 0x466   : > { %p1404_p0 = scmp.ge.s32.totalorder %s1118_s27, 2  ;;  %s660_s29 = scalar_lea.sflag [#allocation4], %s659_s16 }
 0x468   : > { %p864_p5 = pnand %p1404_p0, %p1403_p12 }
 0x46a   : > { %p865_p3 = pneg %p864_p5 }
 0x46c   : > { %1101 = dma.done.wait (%p865_p3), %s660_s29, 64  }
 0x46d   : > { %1103 = vsyncadd (%p865_p3), %s660_s29, 4294967232  ;;  %p22_p7 = scmp.ge.s32.totalorder %s1254_s14, 4   ;;  %s1405_s24 = smov %s1110_s25 }
 0x46e   : > { %s1406_s25 = smov %s1114_s26  ;;  %s1407_s26 = smov %s1264_s17 }
 0x46f   : > { %s1408_s27 = smov %s1254_s14  ;;  %24 = sbr.rel (!%p22_p7) target bundleno = 10 (0xa), region = 105 }
 0x474   :  { %665 = vsyncpa [#allocation3], 1 }
 0x475   :  { %667 = vsyncpa [#allocation3 + $0x1], 1 }
 0x476   :  { %668 = vsyncpa [#allocation6], 1 }
 0x477   :  { %669 = vsyncpa [#allocation9], 1 }
 0x478   :  { %670 = vsyncpa [#allocation4], 1 }
 0x479   :  { %672 = vsyncpa [#allocation4 + $0x1], 1 }

</bundles_post_ra>
